<compile_context>
chip_gen: v6e
topology: v6e:2x2x1
jax: 0.10.0
libtpu: 0.0.40
codegen_flags: <defaults>
</compile_context>

<pallas_src>
import functools

import jax
import jax.numpy as jnp
from jax.experimental import pallas as pl
from jax.experimental.pallas import tpu as pltpu

# config values (synthetic, matching the module's hyperparameters)
NEURAL_NUMS_A_1 = 64   # config['neuron_nums_a_1']
NEURAL_NUMS_A_2 = 32   # config['neuron_nums_a_2']

# padded parameter slab layout (lane-dense, 128 wide)
H_PAD = 128                  # padded hidden / weight-column width
W_SLOT = 128                 # rows reserved per weight matrix
PARAM_ROWS = 3 * W_SLOT + 8  # 384 weight rows + b1/b2/b3 rows + pad -> 392

MAX_TILE_B = 512             # upper bound on batch rows per grid step


def _round_up(n, m):
    return -(-n // m) * m


def actor_kernel(p_ref, x_ref, o_ref, *, feat_p, n_act):
    """One batch tile: fused fc1+ReLU, fc2+ReLU, out+tanh.

    p_ref: (PARAM_ROWS, 128) resident param slab (constant block index).
    x_ref: (tile_b, feat_p) activations.
    o_ref: (tile_b, n_act) output (masked store, only real action lanes).
    """
    x = x_ref[...]                               # (tile_b, feat_p)
    w1 = p_ref[0:feat_p, :]                      # (feat_p, 128) real rows only
    w2 = p_ref[W_SLOT:2 * W_SLOT, :]             # (128, 128) zero-padded
    w3 = p_ref[2 * W_SLOT:3 * W_SLOT, :]         # (128, 128) zero-padded
    b1 = p_ref[3 * W_SLOT + 0:3 * W_SLOT + 1, :]  # (1, 128)
    b2 = p_ref[3 * W_SLOT + 1:3 * W_SLOT + 2, :]
    b3 = p_ref[3 * W_SLOT + 2:3 * W_SLOT + 3, :]

    h1 = jnp.maximum(
        jnp.dot(x, w1, preferred_element_type=jnp.float32) + b1, 0.0)
    h2 = jnp.maximum(
        jnp.dot(h1, w2, preferred_element_type=jnp.float32) + b2, 0.0)
    o = jnp.dot(h2, w3, preferred_element_type=jnp.float32) + b3
    o_ref[...] = jnp.tanh(o[:, :n_act]).astype(o_ref.dtype)


def actor_forward(x, param_slab, action_numbers, *, max_tile_b=MAX_TILE_B):
    """x: (batch, feature_numbers) f32.  param_slab: (PARAM_ROWS, 128) f32."""
    x = x.astype(jnp.float32)
    batch, feat = x.shape
    feat_p = _round_up(feat, 8)          # keep W1 row slice sublane-aligned

    # batch tiling: pad only to a multiple of 8; big batches get big tiles but
    # keep >= 2 grid steps so the "parallel" axis can shard across 2 TCs (v7x).
    b8 = _round_up(batch, 8)
    if b8 <= 16:
        tile_b = b8                       # tiny batch: single small tile
    else:
        tile_b = min(max_tile_b, _round_up(-(-b8 // 2), 8))
    b_pad = _round_up(b8, tile_b)

    if (b_pad, feat_p) != (batch, feat):
        x_in = jnp.pad(x, ((0, b_pad - batch), (0, feat_p - feat)))
    else:
        x_in = x                          # no wrapper copy in the common case

    grid = (b_pad // tile_b,)
    flops = 2 * b_pad * H_PAD * (feat_p + 2 * H_PAD)
    bytes_accessed = 4 * (PARAM_ROWS * H_PAD
                          + b_pad * feat_p
                          + b_pad * action_numbers)

    kernel = functools.partial(actor_kernel, feat_p=feat_p, n_act=action_numbers)

    out = pl.pallas_call(
        kernel,
        out_shape=jax.ShapeDtypeStruct((b_pad, action_numbers), jnp.float32),
        grid=grid,
        in_specs=[
            # weights/biases: constant block index -> DMA'd once, VMEM-resident
            pl.BlockSpec((PARAM_ROWS, H_PAD), lambda i: (0, 0)),
            # activations: one batch tile per grid step (pipelined)
            pl.BlockSpec((tile_b, feat_p), lambda i: (i, 0)),
        ],
        out_specs=pl.BlockSpec((tile_b, action_numbers), lambda i: (i, 0)),
        compiler_params=pltpu.CompilerParams(
            dimension_semantics=("parallel",)),
        cost_estimate=pl.CostEstimate(
            flops=flops,
            transcendentals=b_pad * action_numbers,
            bytes_accessed=bytes_accessed),
    )(param_slab, x_in)

    if b_pad != batch:
        out = out[:batch]
    return out


def init_actor_params(key, feature_numbers, action_numbers):
    """Deterministic init mimicking nn.Linear default (uniform +-1/sqrt(fan_in)).

    Weights are stored [in_features, out_features] (transposed vs. PyTorch).
    """
    def linear(key, fan_in, fan_out):
        kw, kb = jax.random.split(key)
        bound = 1.0 / jnp.sqrt(float(fan_in))
        w = jax.random.uniform(kw, (fan_in, fan_out), jnp.float32, -bound, bound)
        b = jax.random.uniform(kb, (1, fan_out), jnp.float32, -bound, bound)
        return w, b

    k1, k2, k3 = jax.random.split(key, 3)
    w1, b1 = linear(k1, feature_numbers, NEURAL_NUMS_A_1)
    w2, b2 = linear(k2, NEURAL_NUMS_A_1, NEURAL_NUMS_A_2)
    w3, b3 = linear(k3, NEURAL_NUMS_A_2, action_numbers)
    return (w1, b1, w2, b2, w3, b3)


def pack_actor_params(w1, b1, w2, b2, w3, b3):
    """Pack (and zero-pad) all params into one lane-dense (PARAM_ROWS, 128) slab."""
    for w in (w1, w2, w3):
        assert w.shape[0] <= W_SLOT and w.shape[1] <= H_PAD, (
            "layer dims must be <= 128 for this packed layout")

    def pad_w(w):
        buf = jnp.zeros((W_SLOT, H_PAD), jnp.float32)
        return buf.at[: w.shape[0], : w.shape[1]].set(w)

    def pad_b(b):
        buf = jnp.zeros((H_PAD,), jnp.float32)
        return buf.at[: b.shape[-1]].set(b.reshape(-1))

    slab = jnp.zeros((PARAM_ROWS, H_PAD), jnp.float32)
    slab = slab.at[0:W_SLOT].set(pad_w(w1))
    slab = slab.at[W_SLOT:2 * W_SLOT].set(pad_w(w2))
    slab = slab.at[2 * W_SLOT:3 * W_SLOT].set(pad_w(w3))
    slab = slab.at[3 * W_SLOT + 0].set(pad_b(b1))
    slab = slab.at[3 * W_SLOT + 1].set(pad_b(b2))
    slab = slab.at[3 * W_SLOT + 2].set(pad_b(b3))
    return slab


def _reference(x, params):
    w1, b1, w2, b2, w3, b3 = params
    h1 = jnp.maximum(x @ w1 + b1, 0.0)
    h2 = jnp.maximum(h1 @ w2 + b2, 0.0)
    return jnp.tanh(h2 @ w3 + b3)


if __name__ == "__main__":
    feature_numbers = 16
    action_numbers = 4

    key = jax.random.PRNGKey(0)
    kp, kx1, kx2 = jax.random.split(key, 3)
    raw_params = init_actor_params(kp, feature_numbers, action_numbers)
    param_slab = pack_actor_params(*raw_params)

    # small inference-style batch (single-tile path, no padding)
    x_small = jax.random.normal(kx1, (8, feature_numbers), jnp.float32)
    out_small = jax.block_until_ready(
        actor_forward(x_small, param_slab, action_numbers))
    ref_small = _reference(x_small, raw_params)
    assert out_small.shape == (8, action_numbers)
    assert jnp.allclose(out_small, ref_small, atol=1e-5), "mismatch (small batch)"

    # larger batch (multi-step grid + batch padding path)
    x_big = jax.random.normal(kx2, (300, feature_numbers), jnp.float32)
    out_big = jax.block_until_ready(
        actor_forward(x_big, param_slab, action_numbers))
    ref_big = _reference(x_big, raw_params)
    assert out_big.shape == (300, action_numbers)
    assert jnp.allclose(out_big, ref_big, atol=1e-5), "mismatch (large batch)"

    print("KERNEL_OK")
</pallas_src>

<mosaic_0001>
module attributes {stable_mosaic.version = 11 : i64} {
  func.func @actor_kernel(%arg0: i32, %arg1: memref<392x128xf32, #tpu.memory_space<vmem>>, %arg2: memref<8x16xf32, #tpu.memory_space<vmem>>, %arg3: memref<8x4xf32, #tpu.memory_space<vmem>>) attributes {dimension_semantics = [#tpu.dimension_semantics<parallel>], iteration_bounds = array<i64: 1>, scalar_prefetch = 0 : i64, scratch_operands = 0 : i64, tpu.core_type = #tpu.core_type<tc>, window_params = [{pipeline_mode = #tpu.pipeline_mode<synchronous>, transform_indices = @transform_0, window_bounds = array<i64: 392, 128>}, {transform_indices = @transform_1, window_bounds = array<i64: 8, 16>}, {transform_indices = @transform_2, window_bounds = array<i64: 8, 4>}]} {
    %c0 = arith.constant 0 : index
    %c0_0 = arith.constant 0 : index
    %0 = vector.load %arg2[%c0, %c0_0] : memref<8x16xf32, #tpu.memory_space<vmem>>, vector<8x16xf32>
    %c0_1 = arith.constant 0 : index
    %c0_2 = arith.constant 0 : index
    %1 = vector.load %arg1[%c0_1, %c0_2] : memref<392x128xf32, #tpu.memory_space<vmem>>, vector<16x128xf32>
    %c128 = arith.constant 128 : index
    %c0_3 = arith.constant 0 : index
    %2 = vector.load %arg1[%c128, %c0_3] : memref<392x128xf32, #tpu.memory_space<vmem>>, vector<128x128xf32>
    %c256 = arith.constant 256 : index
    %c0_4 = arith.constant 0 : index
    %3 = vector.load %arg1[%c256, %c0_4] : memref<392x128xf32, #tpu.memory_space<vmem>>, vector<128x128xf32>
    %c384 = arith.constant 384 : index
    %c0_5 = arith.constant 0 : index
    %4 = vector.load %arg1[%c384, %c0_5] : memref<392x128xf32, #tpu.memory_space<vmem>>, vector<1x128xf32>
    %c385 = arith.constant 385 : index
    %c0_6 = arith.constant 0 : index
    %5 = vector.load %arg1[%c385, %c0_6] : memref<392x128xf32, #tpu.memory_space<vmem>>, vector<1x128xf32>
    %c386 = arith.constant 386 : index
    %c0_7 = arith.constant 0 : index
    %6 = vector.load %arg1[%c386, %c0_7] : memref<392x128xf32, #tpu.memory_space<vmem>>, vector<1x128xf32>
    %cst = arith.constant dense<0.000000e+00> : vector<8x128xf32>
    %7 = tpu.matmul %0, %1, %cst {dimension_numbers = #tpu.dot_dimension_numbers<[1], [0], [0], [1], [0, 0, 1, 1], [], []>} : vector<8x16xf32>, vector<16x128xf32>, vector<8x128xf32> -> vector<8x128xf32>
    %8 = vector.broadcast %4 : vector<1x128xf32> to vector<8x128xf32>
    %9 = arith.addf %7, %8 : vector<8x128xf32>
    %cst_8 = arith.constant 0.000000e+00 : f32
    %10 = vector.broadcast %cst_8 : f32 to vector<8x128xf32>
    %11 = arith.maximumf %9, %10 : vector<8x128xf32>
    %cst_9 = arith.constant dense<0.000000e+00> : vector<8x128xf32>
    %12 = tpu.matmul %11, %2, %cst_9 {dimension_numbers = #tpu.dot_dimension_numbers<[1], [0], [0], [1], [0, 0, 1, 1], [], []>} : vector<8x128xf32>, vector<128x128xf32>, vector<8x128xf32> -> vector<8x128xf32>
    %13 = vector.broadcast %5 : vector<1x128xf32> to vector<8x128xf32>
    %14 = arith.addf %12, %13 : vector<8x128xf32>
    %cst_10 = arith.constant 0.000000e+00 : f32
    %15 = vector.broadcast %cst_10 : f32 to vector<8x128xf32>
    %16 = arith.maximumf %14, %15 : vector<8x128xf32>
    %cst_11 = arith.constant dense<0.000000e+00> : vector<8x128xf32>
    %17 = tpu.matmul %16, %3, %cst_11 {dimension_numbers = #tpu.dot_dimension_numbers<[1], [0], [0], [1], [0, 0, 1, 1], [], []>} : vector<8x128xf32>, vector<128x128xf32>, vector<8x128xf32> -> vector<8x128xf32>
    %18 = vector.broadcast %6 : vector<1x128xf32> to vector<8x128xf32>
    %19 = arith.addf %17, %18 : vector<8x128xf32>
    %20 = vector.extract_strided_slice %19 {offsets = [0, 0], sizes = [8, 4], strides = [1, 1]} : vector<8x128xf32> to vector<8x4xf32>
    %21 = math.tanh %20 : vector<8x4xf32>
    %c0_12 = arith.constant 0 : index
    %c0_13 = arith.constant 0 : index
    %22 = vector.load %arg3[%c0_12, %c0_13] : memref<8x4xf32, #tpu.memory_space<vmem>>, vector<8x4xf32>
    tpu.vector_store %arg3[%c0_12, %c0_13], %21 {strides = array<i32>} : memref<8x4xf32, #tpu.memory_space<vmem>>, vector<8x4xf32>,
    return
  }
  func.func @transform_0(%arg0: i32) -> (i32, i32) {
    %c0_i32 = arith.constant 0 : i32
    %c0_i32_0 = arith.constant 0 : i32
    %c0_i32_1 = arith.constant 0 : i32
    return %c0_i32, %c0_i32_0 : i32, i32
  }
  func.func @transform_1(%arg0: i32) -> (i32, i32) {
    %c0_i32 = arith.constant 0 : i32
    %c0_i32_0 = arith.constant 0 : i32
    return %arg0, %c0_i32 : i32, i32
  }
  func.func @transform_2(%arg0: i32) -> (i32, i32) {
    %c0_i32 = arith.constant 0 : i32
    %c0_i32_0 = arith.constant 0 : i32
    return %arg0, %c0_i32 : i32, i32
  }
}

</mosaic_0001>

<bundles_post_ra>
// kernel: tpu_custom_call.1
= control target key start
LH: loop header
LB: loop body
LE: loop exit
PB: predicated region body
PF: predicated region fallthrough
CT: control target
= control target key end

     0   :  { %7 = vsyncpa [#allocation3], 0  ;;  %s552_s0 = inlined_call_operand.hbm [shape: f32[392,128], index: 0, kind: input, shape index: {}]   ;;  %s553_s1 = inlined_call_operand.hbm [shape: f32[8,16], index: 1, kind: input, shape index: {}]   ;;  %s554_s2 = inlined_call_operand.vmem [shape: f32[8,4], index: 2, kind: output, shape index: {}]  }
   0x1   :  { %8 = vsyncpa [#allocation5], 0  ;;  %s482_s9 = smov [#allocation2]  }
   0x2   :  { %s14_s10 = sshll.u32 %s482_s9, 4  ;;  %s15_s10 = int_to_ptr.vmem [resolvable:$true] %s14_s10 }
   0x3   :  { %s446_s11 = scalar_lea.vmem %s15_s10, 6272  ;;  %p451_p1 = scmp.lt.s32.totalorder %s15_s10, %s15_s10 }
   0x4   :  { %p447_p0 = scmp.ne.s32.totalorder %s15_s10, %s446_s11  ;;  %p452_p2 = scmp.lt.s32.totalorder %s446_s11, %s446_s11 }
   0x6   :  { %p453_p3 = por %p452_p2, %p451_p1 }
   0x8   :  { %p454_p4 = pnand %p453_p3, %p447_p0 }
   0xa   :  { %457 = shalt.err (!%p454_p4)
}
   0xb   :  { %s483_s12 = smov 128   ;;  %s484_s13 = smov 8  }
   0xc   :  { %20 = dma.hbm_to_vmem [thread:$0]  %s552_s0, 6272, %s15_s10, [#allocation3], %s483_s12, %s483_s12, %s484_s13  }
   0xd   :  { %s485_s16 = smov [#allocation4]  }
   0xe   :  { %s27_s17 = sshll.u32 %s485_s16, 4  ;;  %s28_s17 = int_to_ptr.vmem [resolvable:$true] %s27_s17 }
   0xf   :  { %s466_s18 = scalar_lea.vmem %s28_s17, 128  ;;  %p471_p6 = scmp.lt.s32.totalorder %s28_s17, %s28_s17 }
  0x10   :  { %p467_p5 = scmp.ne.s32.totalorder %s28_s17, %s466_s18  ;;  %p472_p7 = scmp.lt.s32.totalorder %s466_s18, %s466_s18 }
  0x12   :  { %p473_p8 = por %p472_p7, %p471_p6 }
  0x14   :  { %p474_p9 = pnand %p473_p8, %p467_p5 }
  0x16   :  { %477 = shalt.err (!%p474_p9)
}
  0x17   :  { %30 = dma.hbm_to_vmem [thread:$0]  %s553_s1, 128, %s28_s17, [#allocation5]  }
  0x18   :  { %478 = dma.done.wait [#allocation3], 6272  }
  0x19   :  { %479 = vsyncadd [#allocation3], 4294961024 }
  0x1a   :  { %480 = dma.done.wait [#allocation5], 128  }
  0x1b   :  { %481 = vsyncadd [#allocation5], 4294967168  ;;  %v486_v0 = vmov 0.0   ;;  %vm487_vm0 = vmmov 0   ;;  %v39_v1 = vld [vmem:[#allocation2 + $0x8] sm:$0xff]  ;;  %v38_v2 = vld [vmem:[#allocation2] sm:$0xff] }
  0x1c   :  { %353 = vmatprep.subr.mxu0 %v486_v0  ;;  %357 = vmatprep.mubr.msk.f32.mxu0 %vm487_vm0, %v486_v0  ;;  %v37_v3 = vld [vmem:[#allocation4] sm:$0xff]  ;;  %vm79_vm1 = vcmask 130048   ;;  %v55_v4 = vld [vmem:[#allocation2 + $0xf8] sm:$0xff]  ;;  %v54_v5 = vld [vmem:[#allocation2 + $0xf0] sm:$0xff]  ;;  %vm304_vm2 = vcmask 31744  }
  0x1d   :  { %360 = vmatprep.subr.mxu1 %v486_v0  ;;  %392 = vmatprep.mubr.msk.f32.mxu1 %vm487_vm0, %v486_v0  ;;  %v53_v6 = vld [vmem:[#allocation2 + $0xe8] sm:$0xff]  ;;  %v52_v7 = vld [vmem:[#allocation2 + $0xe0] sm:$0xff]  ;;  %v51_v8 = vld [vmem:[#allocation2 + $0xd8] sm:$0xff] }
  0x1e   :  { %354 = vmatpush3.msra.mxu0 %v39_v1  ;;  %361 = vmatpush3.msra.mxu1 %v55_v4  ;;  %v50_v9 = vld [vmem:[#allocation2 + $0xd0] sm:$0xff]  ;;  %v49_v10 = vld [vmem:[#allocation2 + $0xc8] sm:$0xff]  ;;  %v48_v11 = vld [vmem:[#allocation2 + $0xc0] sm:$0xff] }
  0x1f   :  { %355 = vmatprep.subr.mxu0 %v486_v0  ;;  %362 = vmatprep.subr.mxu1 %v486_v0  ;;  %v47_v12 = vld [vmem:[#allocation2 + $0xb8] sm:$0xff]  ;;  %v46_v13 = vld [vmem:[#allocation2 + $0xb0] sm:$0xff]  ;;  %v45_v14 = vld [vmem:[#allocation2 + $0xa8] sm:$0xff] }
  0x20   :  { %356 = vmatpush3.msra.mxu0 %v38_v2  ;;  %363 = vmatpush3.msra.mxu1 %v54_v5  ;;  %v44_v15 = vld [vmem:[#allocation2 + $0xa0] sm:$0xff]  ;;  %v43_v16 = vld [vmem:[#allocation2 + $0x98] sm:$0xff]  ;;  %v42_v17 = vld [vmem:[#allocation2 + $0x90] sm:$0xff] }
  0x21   :  { %358 = vmatmul.mubr.msk.f32.vlgmr.msra.gmra.mxu0 %vm79_vm1, %v37_v3  ;;  %364 = vmatprep.subr.mxu1 %v486_v0  ;;  %v41_v18 = vld [vmem:[#allocation2 + $0x88] sm:$0xff]  ;;  %v40_v19 = vld [vmem:[#allocation2 + $0x80] sm:$0xff]  ;;  %v71_v20 = vld [vmem:[#allocation2 + $0x178] sm:$0xff] }
  0x22   :  { %395 = vmatprep.subr.mxu0 %v486_v0  ;;  %365 = vmatpush3.msra.mxu1 %v53_v6  ;;  %v70_v21 = vld [vmem:[#allocation2 + $0x170] sm:$0xff]  ;;  %v69_v22 = vld [vmem:[#allocation2 + $0x168] sm:$0xff]  ;;  %v68_v23 = vld [vmem:[#allocation2 + $0x160] sm:$0xff] }
  0x23   :  { %427 = vmatprep.mubr.msk.f32.mxu0 %vm487_vm0, %v486_v0  ;;  %366 = vmatprep.subr.mxu1 %v486_v0  ;;  %v67_v24 = vld [vmem:[#allocation2 + $0x158] sm:$0xff]  ;;  %v66_v25 = vld [vmem:[#allocation2 + $0x150] sm:$0xff]  ;;  %v65_v26 = vld [vmem:[#allocation2 + $0x148] sm:$0xff] }
  0x24   :  { %367 = vmatpush3.msra.mxu1 %v52_v7  ;;  %396 = vmatpush3.msra.mxu0 %v71_v20  ;;  %v64_v27 = vld [vmem:[#allocation2 + $0x140] sm:$0xff]  ;;  %v63_v28 = vld [vmem:[#allocation2 + $0x138] sm:$0xff]  ;;  %v62_v29 = vld [vmem:[#allocation2 + $0x130] sm:$0xff] }
  0x25   :  { %368 = vmatprep.subr.mxu1 %v486_v0  ;;  %397 = vmatprep.subr.mxu0 %v486_v0  ;;  %v61_v30 = vld [vmem:[#allocation2 + $0x128] sm:$0xff]  ;;  %v60_v31 = vld [vmem:[#allocation2 + $0x120] sm:$0xff]  ;;  %v59_v32 = vld [vmem:[#allocation2 + $0x118] sm:$0xff] }
  0x26   :  { %369 = vmatpush3.msra.mxu1 %v51_v8  ;;  %398 = vmatpush3.msra.mxu0 %v70_v21  ;;  %v312_v33 = vld [vmem:[#allocation2 + $0x180] ss:$0 sm:$0xff]  ;;  %v58_v38 = vld [vmem:[#allocation2 + $0x110] sm:$0xff]  ;;  %v57_v39 = vld [vmem:[#allocation2 + $0x108] sm:$0xff] }
  0x27   :  { %370 = vmatprep.subr.mxu1 %v486_v0  ;;  %399 = vmatprep.subr.mxu0 %v486_v0  ;;  %v56_v40 = vld [vmem:[#allocation2 + $0x100] sm:$0xff] }
  0x28   :  { %371 = vmatpush3.msra.mxu1 %v50_v9  ;;  %400 = vmatpush3.msra.mxu0 %v69_v22  ;;  %v314_v41 = vld [vmem:[#allocation2 + $0x181] ss:$0 sm:$0xff]  ;;  %v315_v46 = vld [vmem:[#allocation2 + $0x182] ss:$0 sm:$0xff] }
  0x29   :  { %372 = vmatprep.subr.mxu1 %v486_v0  ;;  %401 = vmatprep.subr.mxu0 %v486_v0 }
  0x2a   :  { %373 = vmatpush3.msra.mxu1 %v49_v10  ;;  %402 = vmatpush3.msra.mxu0 %v68_v23 }
  0x2b   :  { %374 = vmatprep.subr.mxu1 %v486_v0  ;;  %403 = vmatprep.subr.mxu0 %v486_v0 }
  0x2c   :  { %375 = vmatpush3.msra.mxu1 %v48_v11  ;;  %404 = vmatpush3.msra.mxu0 %v67_v24 }
  0x2d   :  { %376 = vmatprep.subr.mxu1 %v486_v0  ;;  %405 = vmatprep.subr.mxu0 %v486_v0 }
  0x2e   :  { %377 = vmatpush3.msra.mxu1 %v47_v12  ;;  %406 = vmatpush3.msra.mxu0 %v66_v25 }
  0x2f   :  { %378 = vmatprep.subr.mxu1 %v486_v0  ;;  %407 = vmatprep.subr.mxu0 %v486_v0 }
  0x30   :  { %379 = vmatpush3.msra.mxu1 %v46_v13  ;;  %408 = vmatpush3.msra.mxu0 %v65_v26 }
  0x31   :  { %380 = vmatprep.subr.mxu1 %v486_v0  ;;  %409 = vmatprep.subr.mxu0 %v486_v0 }
  0x32   :  { %381 = vmatpush3.msra.mxu1 %v45_v14  ;;  %410 = vmatpush3.msra.mxu0 %v64_v27 }
  0x33   :  { %382 = vmatprep.subr.mxu1 %v486_v0  ;;  %411 = vmatprep.subr.mxu0 %v486_v0 }
  0x34   :  { %383 = vmatpush3.msra.mxu1 %v44_v15  ;;  %412 = vmatpush3.msra.mxu0 %v63_v28 }
  0x35   :  { %384 = vmatprep.subr.mxu1 %v486_v0  ;;  %413 = vmatprep.subr.mxu0 %v486_v0 }
  0x36   :  { %385 = vmatpush3.msra.mxu1 %v43_v16  ;;  %414 = vmatpush3.msra.mxu0 %v62_v29 }
  0x37   :  { %386 = vmatprep.subr.mxu1 %v486_v0  ;;  %415 = vmatprep.subr.mxu0 %v486_v0 }
  0x38   :  { %387 = vmatpush3.msra.mxu1 %v42_v17  ;;  %416 = vmatpush3.msra.mxu0 %v61_v30 }
  0x39   :  { %388 = vmatprep.subr.mxu1 %v486_v0  ;;  %417 = vmatprep.subr.mxu0 %v486_v0 }
  0x3a   :  { %389 = vmatpush3.msra.mxu1 %v41_v18  ;;  %418 = vmatpush3.msra.mxu0 %v60_v31 }
  0x3b   :  { %390 = vmatprep.subr.mxu1 %v486_v0  ;;  %419 = vmatprep.subr.mxu0 %v486_v0 }
  0x3c   :  { %391 = vmatpush3.msra.mxu1 %v40_v19  ;;  %420 = vmatpush3.msra.mxu0 %v59_v32 }
  0x3d   :  { %421 = vmatprep.subr.mxu0 %v486_v0 }
  0x3e   :  { %422 = vmatpush3.msra.mxu0 %v58_v38 }
  0x3f   :  { %423 = vmatprep.subr.mxu0 %v486_v0 }
  0x40   :  { %424 = vmatpush3.msra.mxu0 %v57_v39 }
  0x41   :  { %425 = vmatprep.subr.mxu0 %v486_v0 }
  0x42   :  { %426 = vmatpush3.msra.mxu0 %v56_v40 }
  0xe1   :  { %v149_v34 = vpop.f32.mrf.mxu0 }
  0xe2   :  { %v150_v35 = vadd.f32 %v312_v33, %v149_v34 }
  0xe3   :  { %v359_v36 = vpop.f32.mrf.mxu0 }
  0xe4   :  { %v153_v37 = vmax.f32 %v150_v35, 0.0 }
  0xe6   :  { %393 = vmatmul.mubr.f32.vlgmr.msra.gmra.mxu1 %v153_v37 }
 0x1a6   :  { %v224_v42 = vpop.f32.mrf.mxu1 }
 0x1a7   :  { %v225_v43 = vadd.f32 %v314_v41, %v224_v42 }
 0x1a8   :  { %v394_v44 = vpop.f32.mrf.mxu1 }
 0x1a9   :  { %v228_v45 = vmax.f32 %v225_v43, 0.0 }
 0x1ab   :  { %428 = vmatmul.mubr.f32.vlgmr.msra.gmra.mxu0 %v228_v45 }
 0x26b   :  { %v299_v47 = vpop.f32.mrf.mxu0 }
 0x26c   :  { %v300_v48 = vadd.f32 %v315_v46, %v299_v47 }
 0x26d   :  { %v429_v49 = vpop.f32.mrf.mxu0 }
 0x26e   :  { %436 = vtanh.f32 %v300_v48 }
 0x27b   :  { %v437_v50 = vpop.eup %436 }
 0x27c   :  { %305 = vst.msk [vmem:[%s554_s2] sm:$0xff] %vm304_vm2, %v437_v50 }
 0x27d   :  { %310 = vsyncpa [#allocation3], 1 }
 0x27e   :  { %311 = vsyncpa [#allocation5], 1 }

</bundles_post_ra>
